<compile_context>
chip_gen: v7x
topology: tpu7x:2x2x1
jax: 0.10.0
libtpu: 0.0.40
codegen_flags: <defaults>
</compile_context>

<pallas_src>
import jax
import jax.numpy as jnp
from jax.experimental import pallas as pl
from jax.experimental.pallas import tpu as pltpu

# Deterministic stand-ins for the undefined CFG constants / snn.Leaky defaults.
LIF_BETA = 0.9        # CFG.lif_beta
IAPP = 2.0            # CFG.Iapp
THRESHOLD = 1.0       # snn.Leaky default threshold
SCALE = 0.05
SCALE_IAPP = SCALE * IAPP   # folded constant

_MAX_TIME_TILE = 32         # unroll cap for the in-kernel time loop
_BLOCK_BYTE_BUDGET = 4 * 1024 * 1024   # z + T blocks, double-buffered


def _make_lif_kernel(time_tile):
    """Build a kernel with a statically unrolled time loop of length `time_tile`."""

    def kernel(z_ref, t_ref, v_ref, zprev_ref):
        # z_ref, t_ref : (TB, TN, D) blocks of z / T for (batch-tile, time-tile)
        # v_ref        : (TB, D) f32 VMEM scratch, membrane potential V[k-1]
        # zprev_ref    : (TB, D) f32 VMEM scratch, z row k-1 carried across tiles
        ti = pl.program_id(1)   # time-tile index (sequential axis)

        @pl.when(ti == 0)
        def _():
            # Fresh batch tile: reset the recurrent state.
            v_ref[...] = jnp.zeros_like(v_ref)
            zprev_ref[...] = jnp.zeros_like(zprev_ref)

        v = v_ref[...]
        z_prev = zprev_ref[...]
        out_dtype = t_ref.dtype
        needs_cast = z_ref.dtype != jnp.float32

        # Statically unrolled recurrence over the time slab (static indices only).
        for j in range(time_tile):
            z_row = z_ref[:, j, :]
            if needs_cast:
                z_row = z_row.astype(jnp.float32)

            inp = SCALE * z_prev + SCALE_IAPP
            reset = (v > THRESHOLD).astype(jnp.float32)
            v_new = LIF_BETA * v + inp - reset * THRESHOLD

            if j == 0:
                # Global time index k == 0 (only when ti == 0): V[:,0] = 0,
                # which also forces T[:,0] = (0 > threshold) = 0.
                v_new = jnp.where(ti == 0, jnp.zeros_like(v_new), v_new)

            t_ref[:, j, :] = (v_new > THRESHOLD).astype(out_dtype)

            v = v_new
            z_prev = z_row

        # Carry state into the next time tile of this batch tile.
        v_ref[...] = v
        zprev_ref[...] = z_prev

    return kernel


def _pick_tiles(B, N, D, itemsize):
    # Time tile: fill sublanes / amortize per-grid-step overhead, capped so the
    # static unroll stays small.  (Must be a multiple of 8 or equal N.)
    tn = N if N <= _MAX_TIME_TILE else _MAX_TIME_TILE
    # Batch tile: as many rows as fit the VMEM block budget
    # (z block + T block, each double-buffered => 4 live buffers).
    per_row = max(1, tn * D * itemsize * 4)
    tb = int(max(1, min(B, _BLOCK_BYTE_BUDGET // per_row)))
    return tb, tn


def lif_forward(z):
    """z: (B, N, D) -> spike train T: (B, N, D), same dtype as z."""
    B, N, D = z.shape
    itemsize = jnp.dtype(z.dtype).itemsize
    TB, TN = _pick_tiles(B, N, D, itemsize)

    grid = (pl.cdiv(B, TB), pl.cdiv(N, TN))

    return pl.pallas_call(
        _make_lif_kernel(TN),
        out_shape=jax.ShapeDtypeStruct((B, N, D), z.dtype),
        grid_spec=pltpu.PrefetchScalarGridSpec(
            num_scalar_prefetch=0,
            grid=grid,
            in_specs=[pl.BlockSpec((TB, TN, D), lambda b, t: (b, t, 0))],
            out_specs=pl.BlockSpec((TB, TN, D), lambda b, t: (b, t, 0)),
            scratch_shapes=[
                pltpu.VMEM((TB, D), jnp.float32),   # V state
                pltpu.VMEM((TB, D), jnp.float32),   # z[k-1] halo carry
            ],
        ),
        compiler_params=pltpu.CompilerParams(
            # batch tiles independent (megacore on v7x); time must stay sequential
            dimension_semantics=("parallel", "arbitrary"),
            vmem_limit_bytes=32 * 1024 * 1024,
        ),
    )(z)


def lif_reference(z):
    """Pure-JAX reference of the same recurrence (identical arithmetic ordering).

    Returns (T, V) so the test can ignore elements whose membrane potential sits
    within float rounding of the threshold.
    """
    B, N, D = z.shape
    zf = z.astype(jnp.float32)

    def step(v_prev, z_prev):
        inp = SCALE * z_prev + SCALE_IAPP
        reset = (v_prev > THRESHOLD).astype(jnp.float32)
        v_new = LIF_BETA * v_prev + inp - reset * THRESHOLD
        spk = (v_new > THRESHOLD).astype(z.dtype)
        return v_new, (spk, v_new)

    v0 = jnp.zeros((B, D), jnp.float32)
    _, (spks, vs) = jax.lax.scan(step, v0, jnp.transpose(zf[:, :-1, :], (1, 0, 2)))
    T = jnp.concatenate([jnp.zeros((1, B, D), z.dtype), spks], axis=0)
    V = jnp.concatenate([jnp.zeros((1, B, D), jnp.float32), vs], axis=0)
    return jnp.transpose(T, (1, 0, 2)), jnp.transpose(V, (1, 0, 2))


if __name__ == "__main__":
    key = jax.random.PRNGKey(0)
    # (B, N, D): small case, multi-time-tile case (exercises the z/V carry across
    # tile seams), and a lane-dense case (D = 128).
    for (B, N, D) in [(2, 8, 32), (2, 64, 32), (4, 64, 128)]:
        key, sub = jax.random.split(key)
        z = jax.random.normal(sub, (B, N, D), dtype=jnp.float32)

        out = jax.block_until_ready(lif_forward(z))
        ref_T, ref_V = lif_reference(z)
        ref_T = jax.block_until_ready(ref_T)

        assert out.shape == (B, N, D)
        # Only compare where V is not within float rounding of the threshold
        # (spike = strict '>' comparison; avoids ulp-level flakiness).
        decisive = jnp.abs(ref_V - THRESHOLD) > 1e-4
        match = jnp.where(decisive, out == ref_T, True)
        assert bool(jnp.all(match)), f"Pallas LIF mismatch vs reference at {(B, N, D)}"

    print("KERNEL_OK")
</pallas_src>

<mosaic_0001>
module attributes {stable_mosaic.version = 11 : i64} {
  func.func @kernel(%arg0: i32, %arg1: i32, %arg2: memref<2x8x32xf32, #tpu.memory_space<vmem>>, %arg3: memref<2x8x32xf32, #tpu.memory_space<vmem>>, %arg4: memref<2x32xf32, #tpu.memory_space<vmem>>, %arg5: memref<2x32xf32, #tpu.memory_space<vmem>>) attributes {dimension_semantics = [#tpu.dimension_semantics<parallel>, #tpu.dimension_semantics<arbitrary>], iteration_bounds = array<i64: 1, 1>, scalar_prefetch = 0 : i64, scratch_operands = 2 : i64, tpu.core_type = #tpu.core_type<tc>, window_params = [{transform_indices = @transform_0, window_bounds = array<i64: 2, 8, 32>}, {transform_indices = @transform_1, window_bounds = array<i64: 2, 8, 32>}]} {
    %c0_i32 = arith.constant 0 : i32
    %0 = arith.cmpi eq, %arg1, %c0_i32 : i32
    %1 = arith.extui %0 : i1 to i32
    %c0_i32_0 = arith.constant 0 : i32
    %2 = arith.cmpi ne, %1, %c0_i32_0 : i32
    scf.if %2 {
      %cst_98 = arith.constant 0.000000e+00 : f32
      %194 = vector.broadcast %cst_98 : f32 to vector<2x32xf32>
      %c0_99 = arith.constant 0 : index
      %c0_100 = arith.constant 0 : index
      %195 = vector.load %arg4[%c0_99, %c0_100] : memref<2x32xf32, #tpu.memory_space<vmem>>, vector<2x32xf32>
      tpu.vector_store %arg4[%c0_99, %c0_100], %194 {strides = array<i32>} : memref<2x32xf32, #tpu.memory_space<vmem>>, vector<2x32xf32>,
      %cst_101 = arith.constant 0.000000e+00 : f32
      %196 = vector.broadcast %cst_101 : f32 to vector<2x32xf32>
      %c0_102 = arith.constant 0 : index
      %c0_103 = arith.constant 0 : index
      %197 = vector.load %arg5[%c0_102, %c0_103] : memref<2x32xf32, #tpu.memory_space<vmem>>, vector<2x32xf32>
      tpu.vector_store %arg5[%c0_102, %c0_103], %196 {strides = array<i32>} : memref<2x32xf32, #tpu.memory_space<vmem>>, vector<2x32xf32>,
    } else {
    }
    %c0 = arith.constant 0 : index
    %c0_1 = arith.constant 0 : index
    %3 = vector.load %arg4[%c0, %c0_1] : memref<2x32xf32, #tpu.memory_space<vmem>>, vector<2x32xf32>
    %c0_2 = arith.constant 0 : index
    %c0_3 = arith.constant 0 : index
    %4 = vector.load %arg5[%c0_2, %c0_3] : memref<2x32xf32, #tpu.memory_space<vmem>>, vector<2x32xf32>
    %c0_4 = arith.constant 0 : index
    %c0_5 = arith.constant 0 : index
    %c0_6 = arith.constant 0 : index
    %5 = vector.load %arg2[%c0_4, %c0_5, %c0_6] : memref<2x8x32xf32, #tpu.memory_space<vmem>>, vector<2x1x32xf32>
    %6 = vector.shape_cast %5 : vector<2x1x32xf32> to vector<2x32xf32>
    %cst = arith.constant 5.000000e-02 : f32
    %7 = vector.broadcast %cst : f32 to vector<2x32xf32>
    %8 = arith.mulf %7, %4 : vector<2x32xf32>
    %cst_7 = arith.constant 1.000000e-01 : f32
    %9 = vector.broadcast %cst_7 : f32 to vector<2x32xf32>
    %10 = arith.addf %8, %9 : vector<2x32xf32>
    %cst_8 = arith.constant 1.000000e+00 : f32
    %11 = vector.broadcast %cst_8 : f32 to vector<2x32xf32>
    %12 = arith.cmpf ogt, %3, %11 : vector<2x32xf32>
    %13 = arith.extui %12 : vector<2x32xi1> to vector<2x32xi32>
    %14 = arith.sitofp %13 : vector<2x32xi32> to vector<2x32xf32>
    %cst_9 = arith.constant 0.899999976 : f32
    %15 = vector.broadcast %cst_9 : f32 to vector<2x32xf32>
    %16 = arith.mulf %15, %3 : vector<2x32xf32>
    %17 = arith.addf %16, %10 : vector<2x32xf32>
    %cst_10 = arith.constant 1.000000e+00 : f32
    %18 = vector.broadcast %cst_10 : f32 to vector<2x32xf32>
    %19 = arith.mulf %14, %18 : vector<2x32xf32>
    %20 = arith.subf %17, %19 : vector<2x32xf32>
    %c0_i32_11 = arith.constant 0 : i32
    %21 = arith.cmpi eq, %arg1, %c0_i32_11 : i32
    %cst_12 = arith.constant 0.000000e+00 : f32
    %22 = vector.broadcast %cst_12 : f32 to vector<2x32xf32>
    %23 = arith.select %21, %22, %20 : vector<2x32xf32>
    %cst_13 = arith.constant 1.000000e+00 : f32
    %24 = vector.broadcast %cst_13 : f32 to vector<2x32xf32>
    %25 = arith.cmpf ogt, %23, %24 : vector<2x32xf32>
    %26 = arith.extui %25 : vector<2x32xi1> to vector<2x32xi32>
    %27 = arith.sitofp %26 : vector<2x32xi32> to vector<2x32xf32>
    %c0_14 = arith.constant 0 : index
    %c0_15 = arith.constant 0 : index
    %c0_16 = arith.constant 0 : index
    %28 = vector.load %arg3[%c0_14, %c0_15, %c0_16] : memref<2x8x32xf32, #tpu.memory_space<vmem>>, vector<2x1x32xf32>
    %29 = vector.shape_cast %28 : vector<2x1x32xf32> to vector<2x32xf32>
    %30 = vector.shape_cast %27 : vector<2x32xf32> to vector<2x1x32xf32>
    tpu.vector_store %arg3[%c0_14, %c0_15, %c0_16], %30 {strides = array<i32>} : memref<2x8x32xf32, #tpu.memory_space<vmem>>, vector<2x1x32xf32>,
    %c0_17 = arith.constant 0 : index
    %c1 = arith.constant 1 : index
    %c0_18 = arith.constant 0 : index
    %31 = vector.load %arg2[%c0_17, %c1, %c0_18] : memref<2x8x32xf32, #tpu.memory_space<vmem>>, vector<2x1x32xf32>
    %32 = vector.shape_cast %31 : vector<2x1x32xf32> to vector<2x32xf32>
    %cst_19 = arith.constant 5.000000e-02 : f32
    %33 = vector.broadcast %cst_19 : f32 to vector<2x32xf32>
    %34 = arith.mulf %33, %6 : vector<2x32xf32>
    %cst_20 = arith.constant 1.000000e-01 : f32
    %35 = vector.broadcast %cst_20 : f32 to vector<2x32xf32>
    %36 = arith.addf %34, %35 : vector<2x32xf32>
    %cst_21 = arith.constant 1.000000e+00 : f32
    %37 = vector.broadcast %cst_21 : f32 to vector<2x32xf32>
    %38 = arith.cmpf ogt, %23, %37 : vector<2x32xf32>
    %39 = arith.extui %38 : vector<2x32xi1> to vector<2x32xi32>
    %40 = arith.sitofp %39 : vector<2x32xi32> to vector<2x32xf32>
    %cst_22 = arith.constant 0.899999976 : f32
    %41 = vector.broadcast %cst_22 : f32 to vector<2x32xf32>
    %42 = arith.mulf %41, %23 : vector<2x32xf32>
    %43 = arith.addf %42, %36 : vector<2x32xf32>
    %cst_23 = arith.constant 1.000000e+00 : f32
    %44 = vector.broadcast %cst_23 : f32 to vector<2x32xf32>
    %45 = arith.mulf %40, %44 : vector<2x32xf32>
    %46 = arith.subf %43, %45 : vector<2x32xf32>
    %cst_24 = arith.constant 1.000000e+00 : f32
    %47 = vector.broadcast %cst_24 : f32 to vector<2x32xf32>
    %48 = arith.cmpf ogt, %46, %47 : vector<2x32xf32>
    %49 = arith.extui %48 : vector<2x32xi1> to vector<2x32xi32>
    %50 = arith.sitofp %49 : vector<2x32xi32> to vector<2x32xf32>
    %c0_25 = arith.constant 0 : index
    %c1_26 = arith.constant 1 : index
    %c0_27 = arith.constant 0 : index
    %51 = vector.load %arg3[%c0_25, %c1_26, %c0_27] : memref<2x8x32xf32, #tpu.memory_space<vmem>>, vector<2x1x32xf32>
    %52 = vector.shape_cast %51 : vector<2x1x32xf32> to vector<2x32xf32>
    %53 = vector.shape_cast %50 : vector<2x32xf32> to vector<2x1x32xf32>
    tpu.vector_store %arg3[%c0_25, %c1_26, %c0_27], %53 {strides = array<i32>} : memref<2x8x32xf32, #tpu.memory_space<vmem>>, vector<2x1x32xf32>,
    %c0_28 = arith.constant 0 : index
    %c2 = arith.constant 2 : index
    %c0_29 = arith.constant 0 : index
    %54 = vector.load %arg2[%c0_28, %c2, %c0_29] : memref<2x8x32xf32, #tpu.memory_space<vmem>>, vector<2x1x32xf32>
    %55 = vector.shape_cast %54 : vector<2x1x32xf32> to vector<2x32xf32>
    %cst_30 = arith.constant 5.000000e-02 : f32
    %56 = vector.broadcast %cst_30 : f32 to vector<2x32xf32>
    %57 = arith.mulf %56, %32 : vector<2x32xf32>
    %cst_31 = arith.constant 1.000000e-01 : f32
    %58 = vector.broadcast %cst_31 : f32 to vector<2x32xf32>
    %59 = arith.addf %57, %58 : vector<2x32xf32>
    %cst_32 = arith.constant 1.000000e+00 : f32
    %60 = vector.broadcast %cst_32 : f32 to vector<2x32xf32>
    %61 = arith.cmpf ogt, %46, %60 : vector<2x32xf32>
    %62 = arith.extui %61 : vector<2x32xi1> to vector<2x32xi32>
    %63 = arith.sitofp %62 : vector<2x32xi32> to vector<2x32xf32>
    %cst_33 = arith.constant 0.899999976 : f32
    %64 = vector.broadcast %cst_33 : f32 to vector<2x32xf32>
    %65 = arith.mulf %64, %46 : vector<2x32xf32>
    %66 = arith.addf %65, %59 : vector<2x32xf32>
    %cst_34 = arith.constant 1.000000e+00 : f32
    %67 = vector.broadcast %cst_34 : f32 to vector<2x32xf32>
    %68 = arith.mulf %63, %67 : vector<2x32xf32>
    %69 = arith.subf %66, %68 : vector<2x32xf32>
    %cst_35 = arith.constant 1.000000e+00 : f32
    %70 = vector.broadcast %cst_35 : f32 to vector<2x32xf32>
    %71 = arith.cmpf ogt, %69, %70 : vector<2x32xf32>
    %72 = arith.extui %71 : vector<2x32xi1> to vector<2x32xi32>
    %73 = arith.sitofp %72 : vector<2x32xi32> to vector<2x32xf32>
    %c0_36 = arith.constant 0 : index
    %c2_37 = arith.constant 2 : index
    %c0_38 = arith.constant 0 : index
    %74 = vector.load %arg3[%c0_36, %c2_37, %c0_38] : memref<2x8x32xf32, #tpu.memory_space<vmem>>, vector<2x1x32xf32>
    %75 = vector.shape_cast %74 : vector<2x1x32xf32> to vector<2x32xf32>
    %76 = vector.shape_cast %73 : vector<2x32xf32> to vector<2x1x32xf32>
    tpu.vector_store %arg3[%c0_36, %c2_37, %c0_38], %76 {strides = array<i32>} : memref<2x8x32xf32, #tpu.memory_space<vmem>>, vector<2x1x32xf32>,
    %c0_39 = arith.constant 0 : index
    %c3 = arith.constant 3 : index
    %c0_40 = arith.constant 0 : index
    %77 = vector.load %arg2[%c0_39, %c3, %c0_40] : memref<2x8x32xf32, #tpu.memory_space<vmem>>, vector<2x1x32xf32>
    %78 = vector.shape_cast %77 : vector<2x1x32xf32> to vector<2x32xf32>
    %cst_41 = arith.constant 5.000000e-02 : f32
    %79 = vector.broadcast %cst_41 : f32 to vector<2x32xf32>
    %80 = arith.mulf %79, %55 : vector<2x32xf32>
    %cst_42 = arith.constant 1.000000e-01 : f32
    %81 = vector.broadcast %cst_42 : f32 to vector<2x32xf32>
    %82 = arith.addf %80, %81 : vector<2x32xf32>
    %cst_43 = arith.constant 1.000000e+00 : f32
    %83 = vector.broadcast %cst_43 : f32 to vector<2x32xf32>
    %84 = arith.cmpf ogt, %69, %83 : vector<2x32xf32>
    %85 = arith.extui %84 : vector<2x32xi1> to vector<2x32xi32>
    %86 = arith.sitofp %85 : vector<2x32xi32> to vector<2x32xf32>
    %cst_44 = arith.constant 0.899999976 : f32
    %87 = vector.broadcast %cst_44 : f32 to vector<2x32xf32>
    %88 = arith.mulf %87, %69 : vector<2x32xf32>
    %89 = arith.addf %88, %82 : vector<2x32xf32>
    %cst_45 = arith.constant 1.000000e+00 : f32
    %90 = vector.broadcast %cst_45 : f32 to vector<2x32xf32>
    %91 = arith.mulf %86, %90 : vector<2x32xf32>
    %92 = arith.subf %89, %91 : vector<2x32xf32>
    %cst_46 = arith.constant 1.000000e+00 : f32
    %93 = vector.broadcast %cst_46 : f32 to vector<2x32xf32>
    %94 = arith.cmpf ogt, %92, %93 : vector<2x32xf32>
    %95 = arith.extui %94 : vector<2x32xi1> to vector<2x32xi32>
    %96 = arith.sitofp %95 : vector<2x32xi32> to vector<2x32xf32>
    %c0_47 = arith.constant 0 : index
    %c3_48 = arith.constant 3 : index
    %c0_49 = arith.constant 0 : index
    %97 = vector.load %arg3[%c0_47, %c3_48, %c0_49] : memref<2x8x32xf32, #tpu.memory_space<vmem>>, vector<2x1x32xf32>
    %98 = vector.shape_cast %97 : vector<2x1x32xf32> to vector<2x32xf32>
    %99 = vector.shape_cast %96 : vector<2x32xf32> to vector<2x1x32xf32>
    tpu.vector_store %arg3[%c0_47, %c3_48, %c0_49], %99 {strides = array<i32>} : memref<2x8x32xf32, #tpu.memory_space<vmem>>, vector<2x1x32xf32>,
    %c0_50 = arith.constant 0 : index
    %c4 = arith.constant 4 : index
    %c0_51 = arith.constant 0 : index
    %100 = vector.load %arg2[%c0_50, %c4, %c0_51] : memref<2x8x32xf32, #tpu.memory_space<vmem>>, vector<2x1x32xf32>
    %101 = vector.shape_cast %100 : vector<2x1x32xf32> to vector<2x32xf32>
    %cst_52 = arith.constant 5.000000e-02 : f32
    %102 = vector.broadcast %cst_52 : f32 to vector<2x32xf32>
    %103 = arith.mulf %102, %78 : vector<2x32xf32>
    %cst_53 = arith.constant 1.000000e-01 : f32
    %104 = vector.broadcast %cst_53 : f32 to vector<2x32xf32>
    %105 = arith.addf %103, %104 : vector<2x32xf32>
    %cst_54 = arith.constant 1.000000e+00 : f32
    %106 = vector.broadcast %cst_54 : f32 to vector<2x32xf32>
    %107 = arith.cmpf ogt, %92, %106 : vector<2x32xf32>
    %108 = arith.extui %107 : vector<2x32xi1> to vector<2x32xi32>
    %109 = arith.sitofp %108 : vector<2x32xi32> to vector<2x32xf32>
    %cst_55 = arith.constant 0.899999976 : f32
    %110 = vector.broadcast %cst_55 : f32 to vector<2x32xf32>
    %111 = arith.mulf %110, %92 : vector<2x32xf32>
    %112 = arith.addf %111, %105 : vector<2x32xf32>
    %cst_56 = arith.constant 1.000000e+00 : f32
    %113 = vector.broadcast %cst_56 : f32 to vector<2x32xf32>
    %114 = arith.mulf %109, %113 : vector<2x32xf32>
    %115 = arith.subf %112, %114 : vector<2x32xf32>
    %cst_57 = arith.constant 1.000000e+00 : f32
    %116 = vector.broadcast %cst_57 : f32 to vector<2x32xf32>
    %117 = arith.cmpf ogt, %115, %116 : vector<2x32xf32>
    %118 = arith.extui %117 : vector<2x32xi1> to vector<2x32xi32>
    %119 = arith.sitofp %118 : vector<2x32xi32> to vector<2x32xf32>
    %c0_58 = arith.constant 0 : index
    %c4_59 = arith.constant 4 : index
    %c0_60 = arith.constant 0 : index
    %120 = vector.load %arg3[%c0_58, %c4_59, %c0_60] : memref<2x8x32xf32, #tpu.memory_space<vmem>>, vector<2x1x32xf32>
    %121 = vector.shape_cast %120 : vector<2x1x32xf32> to vector<2x32xf32>
    %122 = vector.shape_cast %119 : vector<2x32xf32> to vector<2x1x32xf32>
    tpu.vector_store %arg3[%c0_58, %c4_59, %c0_60], %122 {strides = array<i32>} : memref<2x8x32xf32, #tpu.memory_space<vmem>>, vector<2x1x32xf32>,
    %c0_61 = arith.constant 0 : index
    %c5 = arith.constant 5 : index
    %c0_62 = arith.constant 0 : index
    %123 = vector.load %arg2[%c0_61, %c5, %c0_62] : memref<2x8x32xf32, #tpu.memory_space<vmem>>, vector<2x1x32xf32>
    %124 = vector.shape_cast %123 : vector<2x1x32xf32> to vector<2x32xf32>
    %cst_63 = arith.constant 5.000000e-02 : f32
    %125 = vector.broadcast %cst_63 : f32 to vector<2x32xf32>
    %126 = arith.mulf %125, %101 : vector<2x32xf32>
    %cst_64 = arith.constant 1.000000e-01 : f32
    %127 = vector.broadcast %cst_64 : f32 to vector<2x32xf32>
    %128 = arith.addf %126, %127 : vector<2x32xf32>
    %cst_65 = arith.constant 1.000000e+00 : f32
    %129 = vector.broadcast %cst_65 : f32 to vector<2x32xf32>
    %130 = arith.cmpf ogt, %115, %129 : vector<2x32xf32>
    %131 = arith.extui %130 : vector<2x32xi1> to vector<2x32xi32>
    %132 = arith.sitofp %131 : vector<2x32xi32> to vector<2x32xf32>
    %cst_66 = arith.constant 0.899999976 : f32
    %133 = vector.broadcast %cst_66 : f32 to vector<2x32xf32>
    %134 = arith.mulf %133, %115 : vector<2x32xf32>
    %135 = arith.addf %134, %128 : vector<2x32xf32>
    %cst_67 = arith.constant 1.000000e+00 : f32
    %136 = vector.broadcast %cst_67 : f32 to vector<2x32xf32>
    %137 = arith.mulf %132, %136 : vector<2x32xf32>
    %138 = arith.subf %135, %137 : vector<2x32xf32>
    %cst_68 = arith.constant 1.000000e+00 : f32
    %139 = vector.broadcast %cst_68 : f32 to vector<2x32xf32>
    %140 = arith.cmpf ogt, %138, %139 : vector<2x32xf32>
    %141 = arith.extui %140 : vector<2x32xi1> to vector<2x32xi32>
    %142 = arith.sitofp %141 : vector<2x32xi32> to vector<2x32xf32>
    %c0_69 = arith.constant 0 : index
    %c5_70 = arith.constant 5 : index
    %c0_71 = arith.constant 0 : index
    %143 = vector.load %arg3[%c0_69, %c5_70, %c0_71] : memref<2x8x32xf32, #tpu.memory_space<vmem>>, vector<2x1x32xf32>
    %144 = vector.shape_cast %143 : vector<2x1x32xf32> to vector<2x32xf32>
    %145 = vector.shape_cast %142 : vector<2x32xf32> to vector<2x1x32xf32>
    tpu.vector_store %arg3[%c0_69, %c5_70, %c0_71], %145 {strides = array<i32>} : memref<2x8x32xf32, #tpu.memory_space<vmem>>, vector<2x1x32xf32>,
    %c0_72 = arith.constant 0 : index
    %c6 = arith.constant 6 : index
    %c0_73 = arith.constant 0 : index
    %146 = vector.load %arg2[%c0_72, %c6, %c0_73] : memref<2x8x32xf32, #tpu.memory_space<vmem>>, vector<2x1x32xf32>
    %147 = vector.shape_cast %146 : vector<2x1x32xf32> to vector<2x32xf32>
    %cst_74 = arith.constant 5.000000e-02 : f32
    %148 = vector.broadcast %cst_74 : f32 to vector<2x32xf32>
    %149 = arith.mulf %148, %124 : vector<2x32xf32>
    %cst_75 = arith.constant 1.000000e-01 : f32
    %150 = vector.broadcast %cst_75 : f32 to vector<2x32xf32>
    %151 = arith.addf %149, %150 : vector<2x32xf32>
    %cst_76 = arith.constant 1.000000e+00 : f32
    %152 = vector.broadcast %cst_76 : f32 to vector<2x32xf32>
    %153 = arith.cmpf ogt, %138, %152 : vector<2x32xf32>
    %154 = arith.extui %153 : vector<2x32xi1> to vector<2x32xi32>
    %155 = arith.sitofp %154 : vector<2x32xi32> to vector<2x32xf32>
    %cst_77 = arith.constant 0.899999976 : f32
    %156 = vector.broadcast %cst_77 : f32 to vector<2x32xf32>
    %157 = arith.mulf %156, %138 : vector<2x32xf32>
    %158 = arith.addf %157, %151 : vector<2x32xf32>
    %cst_78 = arith.constant 1.000000e+00 : f32
    %159 = vector.broadcast %cst_78 : f32 to vector<2x32xf32>
    %160 = arith.mulf %155, %159 : vector<2x32xf32>
    %161 = arith.subf %158, %160 : vector<2x32xf32>
    %cst_79 = arith.constant 1.000000e+00 : f32
    %162 = vector.broadcast %cst_79 : f32 to vector<2x32xf32>
    %163 = arith.cmpf ogt, %161, %162 : vector<2x32xf32>
    %164 = arith.extui %163 : vector<2x32xi1> to vector<2x32xi32>
    %165 = arith.sitofp %164 : vector<2x32xi32> to vector<2x32xf32>
    %c0_80 = arith.constant 0 : index
    %c6_81 = arith.constant 6 : index
    %c0_82 = arith.constant 0 : index
    %166 = vector.load %arg3[%c0_80, %c6_81, %c0_82] : memref<2x8x32xf32, #tpu.memory_space<vmem>>, vector<2x1x32xf32>
    %167 = vector.shape_cast %166 : vector<2x1x32xf32> to vector<2x32xf32>
    %168 = vector.shape_cast %165 : vector<2x32xf32> to vector<2x1x32xf32>
    tpu.vector_store %arg3[%c0_80, %c6_81, %c0_82], %168 {strides = array<i32>} : memref<2x8x32xf32, #tpu.memory_space<vmem>>, vector<2x1x32xf32>,
    %c0_83 = arith.constant 0 : index
    %c7 = arith.constant 7 : index
    %c0_84 = arith.constant 0 : index
    %169 = vector.load %arg2[%c0_83, %c7, %c0_84] : memref<2x8x32xf32, #tpu.memory_space<vmem>>, vector<2x1x32xf32>
    %170 = vector.shape_cast %169 : vector<2x1x32xf32> to vector<2x32xf32>
    %cst_85 = arith.constant 5.000000e-02 : f32
    %171 = vector.broadcast %cst_85 : f32 to vector<2x32xf32>
    %172 = arith.mulf %171, %147 : vector<2x32xf32>
    %cst_86 = arith.constant 1.000000e-01 : f32
    %173 = vector.broadcast %cst_86 : f32 to vector<2x32xf32>
    %174 = arith.addf %172, %173 : vector<2x32xf32>
    %cst_87 = arith.constant 1.000000e+00 : f32
    %175 = vector.broadcast %cst_87 : f32 to vector<2x32xf32>
    %176 = arith.cmpf ogt, %161, %175 : vector<2x32xf32>
    %177 = arith.extui %176 : vector<2x32xi1> to vector<2x32xi32>
    %178 = arith.sitofp %177 : vector<2x32xi32> to vector<2x32xf32>
    %cst_88 = arith.constant 0.899999976 : f32
    %179 = vector.broadcast %cst_88 : f32 to vector<2x32xf32>
    %180 = arith.mulf %179, %161 : vector<2x32xf32>
    %181 = arith.addf %180, %174 : vector<2x32xf32>
    %cst_89 = arith.constant 1.000000e+00 : f32
    %182 = vector.broadcast %cst_89 : f32 to vector<2x32xf32>
    %183 = arith.mulf %178, %182 : vector<2x32xf32>
    %184 = arith.subf %181, %183 : vector<2x32xf32>
    %cst_90 = arith.constant 1.000000e+00 : f32
    %185 = vector.broadcast %cst_90 : f32 to vector<2x32xf32>
    %186 = arith.cmpf ogt, %184, %185 : vector<2x32xf32>
    %187 = arith.extui %186 : vector<2x32xi1> to vector<2x32xi32>
    %188 = arith.sitofp %187 : vector<2x32xi32> to vector<2x32xf32>
    %c0_91 = arith.constant 0 : index
    %c7_92 = arith.constant 7 : index
    %c0_93 = arith.constant 0 : index
    %189 = vector.load %arg3[%c0_91, %c7_92, %c0_93] : memref<2x8x32xf32, #tpu.memory_space<vmem>>, vector<2x1x32xf32>
    %190 = vector.shape_cast %189 : vector<2x1x32xf32> to vector<2x32xf32>
    %191 = vector.shape_cast %188 : vector<2x32xf32> to vector<2x1x32xf32>
    tpu.vector_store %arg3[%c0_91, %c7_92, %c0_93], %191 {strides = array<i32>} : memref<2x8x32xf32, #tpu.memory_space<vmem>>, vector<2x1x32xf32>,
    %c0_94 = arith.constant 0 : index
    %c0_95 = arith.constant 0 : index
    %192 = vector.load %arg4[%c0_94, %c0_95] : memref<2x32xf32, #tpu.memory_space<vmem>>, vector<2x32xf32>
    tpu.vector_store %arg4[%c0_94, %c0_95], %184 {strides = array<i32>} : memref<2x32xf32, #tpu.memory_space<vmem>>, vector<2x32xf32>,
    %c0_96 = arith.constant 0 : index
    %c0_97 = arith.constant 0 : index
    %193 = vector.load %arg5[%c0_96, %c0_97] : memref<2x32xf32, #tpu.memory_space<vmem>>, vector<2x32xf32>
    tpu.vector_store %arg5[%c0_96, %c0_97], %170 {strides = array<i32>} : memref<2x32xf32, #tpu.memory_space<vmem>>, vector<2x32xf32>,
    return
  }
  func.func @transform_0(%arg0: i32, %arg1: i32) -> (i32, i32, i32) {
    %c0_i32 = arith.constant 0 : i32
    %c0_i32_0 = arith.constant 0 : i32
    return %arg0, %arg1, %c0_i32 : i32, i32, i32
  }
  func.func @transform_1(%arg0: i32, %arg1: i32) -> (i32, i32, i32) {
    %c0_i32 = arith.constant 0 : i32
    %c0_i32_0 = arith.constant 0 : i32
    return %arg0, %arg1, %c0_i32 : i32, i32, i32
  }
}

</mosaic_0001>

<bundles_post_ra>
// kernel: tpu_custom_call.1
= control target key start
LH: loop header
LB: loop body
LE: loop exit
PB: predicated region body
PF: predicated region fallthrough
CT: control target
= control target key end

     0   :  { %6 = vsyncpa [#allocation5], 0  ;;  %s576_s0 = inlined_call_operand.hbm [shape: f32[2,8,32], index: 0, kind: input, shape index: {}]   ;;  %s577_s1 = inlined_call_operand.hbm [shape: f32[2,8,32], index: 1, kind: output, shape index: {}]  }
   0x1   :  { %7 = vsyncpa [#allocation6], 0  ;;  %s473_s6 = smov [#allocation4]   ;;  %s425_s10 = scalar_lea.hbm %s576_s0, 256 }
   0x2   :  { %s13_s7 = sshll.u32 %s473_s6, 4  ;;  %p426_p0 = scmp.ne.s32.totalorder %s576_s0, %s425_s10  ;;  %s14_s7 = int_to_ptr.vmem [resolvable:$true] %s13_s7 }
   0x3   :  { %p429_p1 = scmp.lt.u32.totalorder %s425_s10, %s576_s0 }
   0x5   :  { %p431_p2 = pnand %p429_p1, %p426_p0 }
   0x7   :  { %434 = shalt.err (!%p431_p2)
}
   0x8   :  { %s435_s15 = scalar_lea.vmem %s14_s7, 256  ;;  %p440_p4 = scmp.lt.s32.totalorder %s14_s7, %s14_s7 }
   0x9   :  { %p436_p3 = scmp.ne.s32.totalorder %s14_s7, %s435_s15  ;;  %p441_p5 = scmp.lt.s32.totalorder %s435_s15, %s435_s15 }
   0xb   :  { %p442_p6 = por %p441_p5, %p440_p4 }
   0xd   :  { %p443_p7 = pnand %p442_p6, %p436_p3 }
   0xf   :  { %446 = shalt.err (!%p443_p7)
}
  0x10   :  { %s474_s16 = smov 128   ;;  %s475_s17 = smov 8  }
  0x11   :  { %19 = dma.hbm_to_vmem [thread:$0]  %s576_s0, 256, %s14_s7, [#allocation5], %s474_s16, %s474_s16, %s475_s17  }
  0x12   :  { %469 = dma.done.wait [#allocation5], 256  }
  0x13   :  { %470 = vsyncadd [#allocation5], 4294967040  ;;  %v53_v0 = vlaneseq  ;;  %v476_v1 = vmov 1966171168   ;;  %vm74_vm0 = vcmask 253952   ;;  %v477_v6 = vmov 0.0  }
  0x14   :  { %v51_v2 = vunpack.c.l.s4 %v476_v1  ;;  %v32_v8 = vld [vmem:[#allocation4] sm:$0x1]  ;;  %v33_v9 = vld [vmem:[#allocation4 + $0x8] sm:$0x1]  ;;  %v77_v10 = vld [vmem:[#allocation4 + $0x1] sm:$0x1] }
  0x15   :  { %v54_v3 = vshrl.u32 %v53_v0, 7  ;;  %v78_v11 = vld [vmem:[#allocation4 + $0x9] sm:$0x1]  ;;  %v79_v12 = vmul.f32 0.05, %v32_v8  ;;  %vm87_vm1 = vcmask 1041409  }
  0x16   :  { %v52_v4 = vunpack.c.0.s8 %v51_v2  ;;  %v80_v13 = vmul.f32 0.05, %v33_v9  ;;  %v124_v16 = vmul.f32 0.05, %v77_v10  ;;  %v125_v17 = vmul.f32 0.05, %v78_v11 }
  0x17   :  { %v122_v18 = vld [vmem:[#allocation4 + $0x2] sm:$0x1]  ;;  %v81_v19 = vadd.f32 0.1, %v79_v12  ;;  %v123_v21 = vld [vmem:[#allocation4 + $0xa] sm:$0x1] }
  0x18   :  { %v504_v5 = vsub.s32 %v52_v4, %v54_v3  ;;  %v82_v20 = vadd.f32 0.1, %v80_v13  ;;  %v126_v23 = vadd.f32 0.1, %v124_v16  ;;  %v127_v24 = vadd.f32 0.1, %v125_v17 }
  0x19   :  { %v168_v26 = vmul.f32 0.05, %v122_v18  ;;  %v169_v27 = vmul.f32 0.05, %v123_v21  ;;  %v167_v29 = vld [vmem:[#allocation4 + $0xb] sm:$0x1] }
  0x1a   :  { %v56_v7 = vrot.slane %v477_v6, %v504_v5  ;;  %v86_v25 = vrot.slane %v82_v20, 7  ;;  %v131_v28 = vrot.slane %v127_v24, 7  ;;  %v213_v32 = vmul.f32 0.05, %v167_v29  ;;  %v166_v35 = vld [vmem:[#allocation4 + $0x3] sm:$0x1] }
  0x1b   :  { %v171_v31 = vadd.f32 0.1, %v169_v27  ;;  %v170_v37 = vadd.f32 0.1, %v168_v26  ;;  %v211_v41 = vld [vmem:[#allocation4 + $0xc] sm:$0x1] }
  0x1c   :  { %v64_v14 = vrot.slane %v56_v7, %v504_v5  ;;  %v57_v15 = vcombine.high %v56_v7, %v56_v7  ;;  %v88_v30 = vsel %vm87_vm1, %v86_v25, %v81_v19  ;;  %v132_v34 = vsel %vm87_vm1, %v131_v28, %v126_v23  ;;  %v210_v51 = vld [vmem:[#allocation4 + $0x4] sm:$0x1]  ;;  %v255_v57 = vld [vmem:[#allocation4 + $0xd] sm:$0x1]  ;;  %v254_v3 = vld [vmem:[#allocation4 + $0x5] sm:$0x1] }
  0x1d   :  { %vm92_vm2 = vcmp.gt.f32.partialorder %v88_v30, 1.0  ;;  %v128_v33 = vmul.f32 0.9, %v88_v30  ;;  %v175_v38 = vrot.slane %v171_v31, 7  ;;  %v212_v42 = vmul.f32 0.05, %v166_v35 }
  0x1e   :  { %75 = vst.msk [vmem:[#allocation7] sm:$0x1] %vm74_vm0, %v64_v14  ;;  %v71_v22 = vrot.slane %v57_v15, %v504_v5  ;;  %v412_v36 = vsel %vm92_vm2, 1.0, %v477_v6  ;;  %v215_v43 = vadd.f32 0.1, %v213_v32  ;;  %s478_s0 = smov [#allocation7]  }
  0x1f   :  { %v102_v39 = vrot.slane %v412_v36, %v504_v5  ;;  %v134_v40 = vadd.f32 %v132_v34, %v128_v33  ;;  %v176_v47 = vsel %vm87_vm1, %v175_v38, %v170_v37  ;;  %v257_v48 = vmul.f32 0.05, %v211_v41  ;;  %v299_v11 = vld [vmem:[#allocation4 + $0xe] sm:$0x1]  ;;  %v298_v21 = vld [vmem:[#allocation4 + $0x6] sm:$0x1] }
  0x20   :  { %76 = vst.msk [vmem:[#allocation7 + $0x8] sm:$0x1] %vm74_vm0, %v71_v22  ;;  %v214_v53 = vadd.f32 0.1, %v212_v42  ;;  %v219_v54 = vrot.slane %v215_v43, 7  ;;  %s399_s20 = sshll.u32 %s478_s0, 4  ;;  %s400_s20 = int_to_ptr.vmem [resolvable:$true] %s399_s20 }
  0x21   :  { %v110_v44 = vrot.slane %v102_v39, %v504_v5  ;;  %v135_v45 = vsub.f32 %v134_v40, %v412_v36  ;;  %v103_v46 = vcombine.high %v102_v39, %v102_v39  ;;  %v256_v58 = vmul.f32 0.05, %v210_v51  ;;  %s447_s21 = scalar_lea.vmem %s400_s20, 256  ;;  %p452_p9 = scmp.lt.s32.totalorder %s400_s20, %s400_s20 }
  0x22   :  { %v259_v59 = vadd.f32 0.1, %v257_v48  ;;  %v220_v63 = vsel %vm87_vm1, %v219_v54, %v214_v53  ;;  %v301_v0 = vmul.f32 0.05, %v255_v57  ;;  %v300_v12 = vmul.f32 0.05, %v254_v3  ;;  %p448_p8 = scmp.ne.s32.totalorder %s400_s20, %s447_s21  ;;  %p453_p10 = scmp.lt.s32.totalorder %s447_s21, %s447_s21 }
  0x23   :  { %120 = vst.msk [vmem:[#allocation7 + $0x1] sm:$0x1] %vm74_vm0, %v110_v44  ;;  %v172_v49 = vmul.f32 0.9, %v135_v45  ;;  %v117_v50 = vrot.slane %v103_v46, %v504_v5  ;;  %vm136_vm3 = vcmp.gt.f32.partialorder %v135_v45, 1.0 }
  0x24   :  { %v413_v52 = vsel %vm136_vm3, 1.0, %v477_v6  ;;  %v258_v7 = vadd.f32 0.1, %v256_v58  ;;  %v263_v8 = vrot.slane %v259_v59, 7  ;;  %v303_v13 = vadd.f32 0.1, %v301_v0  ;;  %p454_p11 = por %p453_p10, %p452_p9 }
  0x25   :  { %121 = vst.msk [vmem:[#allocation7 + $0x9] sm:$0x1] %vm74_vm0, %v117_v50  ;;  %v146_v55 = vrot.slane %v413_v52, %v504_v5  ;;  %v178_v56 = vadd.f32 %v176_v47, %v172_v49  ;;  %v345_v18 = vmul.f32 0.05, %v299_v11  ;;  %v302_v23 = vadd.f32 0.1, %v300_v12 }
  0x26   :  { %v264_v17 = vsel %vm87_vm1, %v263_v8, %v258_v7  ;;  %v307_v24 = vrot.slane %v303_v13, 7  ;;  %v344_v27 = vmul.f32 0.05, %v298_v21  ;;  %p455_p12 = pnand %p454_p11, %p448_p8 }
  0x27   :  { %v154_v60 = vrot.slane %v146_v55, %v504_v5  ;;  %v179_v61 = vsub.f32 %v178_v56, %v413_v52  ;;  %v147_v62 = vcombine.high %v146_v55, %v146_v55  ;;  %v347_v28 = vadd.f32 0.1, %v345_v18 }
  0x28   :  { %v308_v32 = vsel %vm87_vm1, %v307_v24, %v302_v23  ;;  %v346_v36 = vadd.f32 0.1, %v344_v27 }
  0x29   :  { %164 = vst.msk [vmem:[#allocation7 + $0x2] sm:$0x1] %vm74_vm0, %v154_v60  ;;  %v216_v1 = vmul.f32 0.9, %v179_v61  ;;  %v161_v2 = vrot.slane %v147_v62, %v504_v5  ;;  %vm180_vm4 = vcmp.gt.f32.partialorder %v179_v61, 1.0  ;;  %v351_v37 = vrot.slane %v347_v28, 7 }
  0x2a   :  { %v414_v4 = vsel %vm180_vm4, 1.0, %v477_v6 }
  0x2b   :  { %165 = vst.msk [vmem:[#allocation7 + $0xa] sm:$0x1] %vm74_vm0, %v161_v2  ;;  %v190_v9 = vrot.slane %v414_v4, %v504_v5  ;;  %v222_v10 = vadd.f32 %v220_v63, %v216_v1  ;;  %v352_v43 = vsel %vm87_vm1, %v351_v37, %v346_v36 }
  0x2d   :  { %v198_v14 = vrot.slane %v190_v9, %v504_v5  ;;  %v223_v15 = vsub.f32 %v222_v10, %v414_v4  ;;  %v191_v16 = vcombine.high %v190_v9, %v190_v9 }
  0x2f   :  { %208 = vst.msk [vmem:[#allocation7 + $0x3] sm:$0x1] %vm74_vm0, %v198_v14  ;;  %v260_v19 = vmul.f32 0.9, %v223_v15  ;;  %v205_v20 = vrot.slane %v191_v16, %v504_v5  ;;  %vm224_vm5 = vcmp.gt.f32.partialorder %v223_v15, 1.0 }
  0x30   :  { %v415_v22 = vsel %vm224_vm5, 1.0, %v477_v6 }
  0x31   :  { %209 = vst.msk [vmem:[#allocation7 + $0xb] sm:$0x1] %vm74_vm0, %v205_v20  ;;  %v234_v25 = vrot.slane %v415_v22, %v504_v5  ;;  %v266_v26 = vadd.f32 %v264_v17, %v260_v19 }
  0x33   :  { %v242_v29 = vrot.slane %v234_v25, %v504_v5  ;;  %v267_v30 = vsub.f32 %v266_v26, %v415_v22  ;;  %v235_v31 = vcombine.high %v234_v25, %v234_v25 }
  0x35   :  { %252 = vst.msk [vmem:[#allocation7 + $0x4] sm:$0x1] %vm74_vm0, %v242_v29  ;;  %v304_v33 = vmul.f32 0.9, %v267_v30  ;;  %v249_v34 = vrot.slane %v235_v31, %v504_v5  ;;  %vm268_vm6 = vcmp.gt.f32.partialorder %v267_v30, 1.0 }
  0x36   :  { %v416_v35 = vsel %vm268_vm6, 1.0, %v477_v6 }
  0x37   :  { %253 = vst.msk [vmem:[#allocation7 + $0xc] sm:$0x1] %vm74_vm0, %v249_v34  ;;  %v278_v38 = vrot.slane %v416_v35, %v504_v5  ;;  %v310_v39 = vadd.f32 %v308_v32, %v304_v33 }
  0x39   :  { %v286_v40 = vrot.slane %v278_v38, %v504_v5  ;;  %v311_v41 = vsub.f32 %v310_v39, %v416_v35  ;;  %v279_v42 = vcombine.high %v278_v38, %v278_v38 }
  0x3b   :  { %296 = vst.msk [vmem:[#allocation7 + $0x5] sm:$0x1] %vm74_vm0, %v286_v40  ;;  %v348_v44 = vmul.f32 0.9, %v311_v41  ;;  %v293_v45 = vrot.slane %v279_v42, %v504_v5  ;;  %vm312_vm7 = vcmp.gt.f32.partialorder %v311_v41, 1.0 }
  0x3c   :  { %v417_v46 = vsel %vm312_vm7, 1.0, %v477_v6 }
  0x3d   :  { %297 = vst.msk [vmem:[#allocation7 + $0xd] sm:$0x1] %vm74_vm0, %v293_v45  ;;  %v322_v47 = vrot.slane %v417_v46, %v504_v5  ;;  %v354_v48 = vadd.f32 %v352_v43, %v348_v44 }
  0x3f   :  { %v330_v49 = vrot.slane %v322_v47, %v504_v5  ;;  %v355_v50 = vsub.f32 %v354_v48, %v417_v46  ;;  %v323_v51 = vcombine.high %v322_v47, %v322_v47 }
  0x41   :  { %340 = vst.msk [vmem:[#allocation7 + $0x6] sm:$0x1] %vm74_vm0, %v330_v49  ;;  %v337_v52 = vrot.slane %v323_v51, %v504_v5  ;;  %vm356_vm8 = vcmp.gt.f32.partialorder %v355_v50, 1.0 }
  0x42   :  { %v418_v53 = vsel %vm356_vm8, 1.0, %v477_v6 }
  0x43   :  { %341 = vst.msk [vmem:[#allocation7 + $0xe] sm:$0x1] %vm74_vm0, %v337_v52  ;;  %v366_v54 = vrot.slane %v418_v53, %v504_v5 }
  0x45   :  { %v374_v55 = vrot.slane %v366_v54, %v504_v5  ;;  %v367_v56 = vcombine.high %v366_v54, %v366_v54 }
  0x47   :  { %384 = vst.msk [vmem:[#allocation7 + $0x7] sm:$0x1] %vm74_vm0, %v374_v55  ;;  %v381_v57 = vrot.slane %v367_v56, %v504_v5 }
  0x49   :  { %385 = vst.msk [vmem:[#allocation7 + $0xf] sm:$0x1] %vm74_vm0, %v381_v57 }
  0x4a   :  { %458 = shalt.err (!%p455_p12)
}
  0x4b   :  { %s459_s24 = scalar_lea.hbm %s577_s1, 256 }
  0x4c   :  { %p460_p13 = scmp.ne.s32.totalorder %s577_s1, %s459_s24  ;;  %p463_p0 = scmp.lt.u32.totalorder %s459_s24, %s577_s1 }
  0x4e   :  { %p465_p1 = pnand %p463_p0, %p460_p13 }
  0x50   :  { %468 = shalt.err (!%p465_p1)
}
  0x51   :  { %405 = dma.vmem_to_hbm [thread:$0]  %s400_s20, 256, %s577_s1, [#allocation6], %s474_s16, %s474_s16, %s475_s17  }
  0x52   :  { %471 = dma.done.wait [#allocation6], 256  }
  0x53   :  { %472 = vsyncadd [#allocation6], 4294967040 }
  0x54   :  { %409 = vsyncpa [#allocation5], 1 }
  0x55   :  { %410 = vsyncpa [#allocation6], 1 }

</bundles_post_ra>
